<compile_context>
chip_gen: v6e
topology: v6e:2x2x1
jax: 0.10.0
libtpu: 0.0.40
codegen_flags: <defaults>
</compile_context>

<pallas_src>
import functools

import jax
import jax.numpy as jnp
from jax.experimental import pallas as pl
from jax.experimental.pallas import tpu as pltpu

_LANE = 128
_SUBLANE = 8


def _round_up(x, m):
    return (x + m - 1) // m * m


def _qnet_kernel(x_ref, w1_ref, b1_ref, w2_ref, b2_ref, w3_ref, b3_ref, o_ref):
    # One batch tile per grid step; all three matmuls + biases + ReLUs fused.
    x = x_ref[...]  # (tb, S_p) in compute dtype (bf16 or f32)
    h1 = jnp.dot(x, w1_ref[...], preferred_element_type=jnp.float32) + b1_ref[...]
    h1 = jnp.maximum(h1, 0.0)  # f32 elementwise
    h2 = jnp.dot(h1.astype(w2_ref.dtype), w2_ref[...],
                 preferred_element_type=jnp.float32) + b2_ref[...]
    h2 = jnp.maximum(h2, 0.0)
    out = jnp.dot(h2.astype(w3_ref.dtype), w3_ref[...],
                  preferred_element_type=jnp.float32) + b3_ref[...]
    o_ref[...] = out.astype(o_ref.dtype)


def _pad2d(a, rows, cols, dtype):
    r, c = a.shape
    return jnp.pad(a.astype(dtype), ((0, rows - r), (0, cols - c)))


@functools.partial(jax.jit, static_argnames=("tile_b", "use_bf16"))
def qnetwork_forward(state, params, *, tile_b=256, use_bf16=True):
    """state: (B, state_size) float32. params: dict of w1,b1,w2,b2,w3,b3 (f32,
    weights stored as (in, out) == PyTorch weight.T). Returns (B, action_size) f32."""
    B, S = state.shape
    H1 = params["w1"].shape[1]
    H2 = params["w2"].shape[1]
    A = params["w3"].shape[1]

    compute_dtype = jnp.bfloat16 if use_bf16 else jnp.float32

    # Lane-pad every contracting / output dim to a multiple of 128 (exact: zero pads).
    S_p = _round_up(max(S, _LANE), _LANE)
    H1_p = _round_up(max(H1, _LANE), _LANE)
    H2_p = _round_up(max(H2, _LANE), _LANE)
    A_p = _round_up(max(A, _LANE), _LANE)

    # Batch tile: amortizes the per-step fixed cost; ~few hundred KiB double-buffered,
    # well within v7x's 64 MiB VMEM.
    tb = min(tile_b, _round_up(B, _SUBLANE))
    tb = _round_up(tb, _SUBLANE)
    B_p = _round_up(B, tb)
    n_tiles = B_p // tb

    x_p = _pad2d(state, B_p, S_p, compute_dtype)
    w1_p = _pad2d(params["w1"], S_p, H1_p, compute_dtype)
    w2_p = _pad2d(params["w2"], H1_p, H2_p, compute_dtype)
    w3_p = _pad2d(params["w3"], H2_p, A_p, compute_dtype)
    b1_p = _pad2d(params["b1"].reshape(1, -1), 1, H1_p, jnp.float32)
    b2_p = _pad2d(params["b2"].reshape(1, -1), 1, H2_p, jnp.float32)
    b3_p = _pad2d(params["b3"].reshape(1, -1), 1, A_p, jnp.float32)

    # Weights/biases: same block for every grid step -> stay VMEM-resident.
    resident = lambda shape: pl.BlockSpec(shape, lambda i: (0, 0))

    out_p = pl.pallas_call(
        _qnet_kernel,
        out_shape=jax.ShapeDtypeStruct((B_p, A_p), jnp.float32),
        grid=(n_tiles,),
        in_specs=[
            pl.BlockSpec((tb, S_p), lambda i: (i, 0)),   # x tile streams
            resident((S_p, H1_p)), resident((1, H1_p)),
            resident((H1_p, H2_p)), resident((1, H2_p)),
            resident((H2_p, A_p)), resident((1, A_p)),
        ],
        out_specs=pl.BlockSpec((tb, A_p), lambda i: (i, 0)),
        compiler_params=pltpu.CompilerParams(
            dimension_semantics=("parallel",)),          # shard across TCs on v7x
    )(x_p, w1_p, b1_p, w2_p, b2_p, w3_p, b3_p)

    return out_p[:B, :A]


def init_qnetwork_params(key, state_size, action_size, fc1_units=64, fc2_units=64):
    """Deterministic init mimicking PyTorch nn.Linear default U(-1/sqrt(fan_in), +1/sqrt(fan_in))."""
    def linear(k, fan_in, fan_out):
        kw, kb = jax.random.split(k)
        bound = 1.0 / jnp.sqrt(float(fan_in))
        w = jax.random.uniform(kw, (fan_in, fan_out), jnp.float32, -bound, bound)
        b = jax.random.uniform(kb, (1, fan_out), jnp.float32, -bound, bound)
        return w, b

    k1, k2, k3 = jax.random.split(key, 3)
    w1, b1 = linear(k1, state_size, fc1_units)
    w2, b2 = linear(k2, fc1_units, fc2_units)
    w3, b3 = linear(k3, fc2_units, action_size)
    return {"w1": w1, "b1": b1, "w2": w2, "b2": b2, "w3": w3, "b3": b3}


def qnetwork_ref(state, params, compute_dtype=jnp.float32):
    """Plain-JAX reference; compute_dtype mirrors the kernel's MXU input dtype."""
    w1 = params["w1"].astype(compute_dtype)
    w2 = params["w2"].astype(compute_dtype)
    w3 = params["w3"].astype(compute_dtype)
    x = state.astype(compute_dtype)
    h1 = jnp.maximum(
        jnp.dot(x, w1, preferred_element_type=jnp.float32) + params["b1"], 0.0)
    h2 = jnp.maximum(
        jnp.dot(h1.astype(compute_dtype), w2, preferred_element_type=jnp.float32)
        + params["b2"], 0.0)
    return (jnp.dot(h2.astype(compute_dtype), w3, preferred_element_type=jnp.float32)
            + params["b3"])


if __name__ == "__main__":
    key = jax.random.PRNGKey(0)
    k_param, k_state, k_state2 = jax.random.split(key, 3)

    batch = 2
    state_size = 8
    action_size = 4

    params = init_qnetwork_params(k_param, state_size, action_size,
                                  fc1_units=64, fc2_units=64)
    state = jax.random.normal(k_state, (batch, state_size), jnp.float32)

    out = jax.block_until_ready(qnetwork_forward(state, params))
    assert out.shape == (batch, action_size)

    ref_same_prec = qnetwork_ref(state, params, compute_dtype=jnp.bfloat16)
    ref_f32 = qnetwork_ref(state, params, compute_dtype=jnp.float32)
    assert jnp.allclose(out, ref_same_prec, atol=1e-3, rtol=1e-3), "mismatch vs bf16 reference"
    assert jnp.allclose(out, ref_f32, atol=5e-2, rtol=5e-2), "mismatch vs f32 reference"

    # Multi-tile / padded-batch path (exercises the batch grid: 300 -> 2 tiles of 256).
    big = jax.random.normal(k_state2, (300, state_size), jnp.float32)
    out_big = jax.block_until_ready(qnetwork_forward(big, params))
    assert out_big.shape == (300, action_size)
    assert jnp.allclose(out_big, qnetwork_ref(big, params, jnp.bfloat16),
                        atol=1e-3, rtol=1e-3), "mismatch vs reference (multi-tile)"

    print("KERNEL_OK")
</pallas_src>

<mosaic_0001>
module attributes {stable_mosaic.version = 11 : i64} {
  func.func @_qnet_kernel(%arg0: i32, %arg1: memref<8x128xbf16, #tpu.memory_space<vmem>>, %arg2: memref<128x128xbf16, #tpu.memory_space<vmem>>, %arg3: memref<1x128xf32, #tpu.memory_space<vmem>>, %arg4: memref<128x128xbf16, #tpu.memory_space<vmem>>, %arg5: memref<1x128xf32, #tpu.memory_space<vmem>>, %arg6: memref<128x128xbf16, #tpu.memory_space<vmem>>, %arg7: memref<1x128xf32, #tpu.memory_space<vmem>>, %arg8: memref<8x128xf32, #tpu.memory_space<vmem>>) attributes {dimension_semantics = [#tpu.dimension_semantics<parallel>], iteration_bounds = array<i64: 1>, scalar_prefetch = 0 : i64, scratch_operands = 0 : i64, tpu.core_type = #tpu.core_type<tc>, window_params = [{transform_indices = @transform_0, window_bounds = array<i64: 8, 128>}, {pipeline_mode = #tpu.pipeline_mode<synchronous>, transform_indices = @transform_1, window_bounds = array<i64: 128, 128>}, {pipeline_mode = #tpu.pipeline_mode<synchronous>, transform_indices = @transform_2, window_bounds = array<i64: 1, 128>}, {pipeline_mode = #tpu.pipeline_mode<synchronous>, transform_indices = @transform_3, window_bounds = array<i64: 128, 128>}, {pipeline_mode = #tpu.pipeline_mode<synchronous>, transform_indices = @transform_4, window_bounds = array<i64: 1, 128>}, {pipeline_mode = #tpu.pipeline_mode<synchronous>, transform_indices = @transform_5, window_bounds = array<i64: 128, 128>}, {pipeline_mode = #tpu.pipeline_mode<synchronous>, transform_indices = @transform_6, window_bounds = array<i64: 1, 128>}, {transform_indices = @transform_7, window_bounds = array<i64: 8, 128>}]} {
    %c0 = arith.constant 0 : index
    %c0_0 = arith.constant 0 : index
    %0 = vector.load %arg1[%c0, %c0_0] : memref<8x128xbf16, #tpu.memory_space<vmem>>, vector<8x128xbf16>
    %c0_1 = arith.constant 0 : index
    %c0_2 = arith.constant 0 : index
    %1 = vector.load %arg2[%c0_1, %c0_2] : memref<128x128xbf16, #tpu.memory_space<vmem>>, vector<128x128xbf16>
    %cst = arith.constant dense<0.000000e+00> : vector<8x128xf32>
    %2 = tpu.matmul %0, %1, %cst {dimension_numbers = #tpu.dot_dimension_numbers<[1], [0], [0], [1], [0, 0, 1, 1], [], []>} : vector<8x128xbf16>, vector<128x128xbf16>, vector<8x128xf32> -> vector<8x128xf32>
    %c0_3 = arith.constant 0 : index
    %c0_4 = arith.constant 0 : index
    %3 = vector.load %arg3[%c0_3, %c0_4] : memref<1x128xf32, #tpu.memory_space<vmem>>, vector<1x128xf32>
    %4 = vector.broadcast %3 : vector<1x128xf32> to vector<8x128xf32>
    %5 = arith.addf %2, %4 : vector<8x128xf32>
    %cst_5 = arith.constant 0.000000e+00 : f32
    %6 = vector.broadcast %cst_5 : f32 to vector<8x128xf32>
    %7 = arith.maximumf %5, %6 : vector<8x128xf32>
    %8 = arith.truncf %7 : vector<8x128xf32> to vector<8x128xbf16>
    %c0_6 = arith.constant 0 : index
    %c0_7 = arith.constant 0 : index
    %9 = vector.load %arg4[%c0_6, %c0_7] : memref<128x128xbf16, #tpu.memory_space<vmem>>, vector<128x128xbf16>
    %cst_8 = arith.constant dense<0.000000e+00> : vector<8x128xf32>
    %10 = tpu.matmul %8, %9, %cst_8 {dimension_numbers = #tpu.dot_dimension_numbers<[1], [0], [0], [1], [0, 0, 1, 1], [], []>} : vector<8x128xbf16>, vector<128x128xbf16>, vector<8x128xf32> -> vector<8x128xf32>
    %c0_9 = arith.constant 0 : index
    %c0_10 = arith.constant 0 : index
    %11 = vector.load %arg5[%c0_9, %c0_10] : memref<1x128xf32, #tpu.memory_space<vmem>>, vector<1x128xf32>
    %12 = vector.broadcast %11 : vector<1x128xf32> to vector<8x128xf32>
    %13 = arith.addf %10, %12 : vector<8x128xf32>
    %cst_11 = arith.constant 0.000000e+00 : f32
    %14 = vector.broadcast %cst_11 : f32 to vector<8x128xf32>
    %15 = arith.maximumf %13, %14 : vector<8x128xf32>
    %16 = arith.truncf %15 : vector<8x128xf32> to vector<8x128xbf16>
    %c0_12 = arith.constant 0 : index
    %c0_13 = arith.constant 0 : index
    %17 = vector.load %arg6[%c0_12, %c0_13] : memref<128x128xbf16, #tpu.memory_space<vmem>>, vector<128x128xbf16>
    %cst_14 = arith.constant dense<0.000000e+00> : vector<8x128xf32>
    %18 = tpu.matmul %16, %17, %cst_14 {dimension_numbers = #tpu.dot_dimension_numbers<[1], [0], [0], [1], [0, 0, 1, 1], [], []>} : vector<8x128xbf16>, vector<128x128xbf16>, vector<8x128xf32> -> vector<8x128xf32>
    %c0_15 = arith.constant 0 : index
    %c0_16 = arith.constant 0 : index
    %19 = vector.load %arg7[%c0_15, %c0_16] : memref<1x128xf32, #tpu.memory_space<vmem>>, vector<1x128xf32>
    %20 = vector.broadcast %19 : vector<1x128xf32> to vector<8x128xf32>
    %21 = arith.addf %18, %20 : vector<8x128xf32>
    %c0_17 = arith.constant 0 : index
    %c0_18 = arith.constant 0 : index
    %22 = vector.load %arg8[%c0_17, %c0_18] : memref<8x128xf32, #tpu.memory_space<vmem>>, vector<8x128xf32>
    tpu.vector_store %arg8[%c0_17, %c0_18], %21 {strides = array<i32>} : memref<8x128xf32, #tpu.memory_space<vmem>>, vector<8x128xf32>,
    return
  }
  func.func @transform_0(%arg0: i32) -> (i32, i32) {
    %c0_i32 = arith.constant 0 : i32
    %c0_i32_0 = arith.constant 0 : i32
    return %arg0, %c0_i32 : i32, i32
  }
  func.func @transform_1(%arg0: i32) -> (i32, i32) {
    %c0_i32 = arith.constant 0 : i32
    %c0_i32_0 = arith.constant 0 : i32
    %c0_i32_1 = arith.constant 0 : i32
    return %c0_i32, %c0_i32_0 : i32, i32
  }
  func.func @transform_2(%arg0: i32) -> (i32, i32) {
    %c0_i32 = arith.constant 0 : i32
    %c0_i32_0 = arith.constant 0 : i32
    %c0_i32_1 = arith.constant 0 : i32
    return %c0_i32, %c0_i32_0 : i32, i32
  }
  func.func @transform_3(%arg0: i32) -> (i32, i32) {
    %c0_i32 = arith.constant 0 : i32
    %c0_i32_0 = arith.constant 0 : i32
    %c0_i32_1 = arith.constant 0 : i32
    return %c0_i32, %c0_i32_0 : i32, i32
  }
  func.func @transform_4(%arg0: i32) -> (i32, i32) {
    %c0_i32 = arith.constant 0 : i32
    %c0_i32_0 = arith.constant 0 : i32
    %c0_i32_1 = arith.constant 0 : i32
    return %c0_i32, %c0_i32_0 : i32, i32
  }
  func.func @transform_5(%arg0: i32) -> (i32, i32) {
    %c0_i32 = arith.constant 0 : i32
    %c0_i32_0 = arith.constant 0 : i32
    %c0_i32_1 = arith.constant 0 : i32
    return %c0_i32, %c0_i32_0 : i32, i32
  }
  func.func @transform_6(%arg0: i32) -> (i32, i32) {
    %c0_i32 = arith.constant 0 : i32
    %c0_i32_0 = arith.constant 0 : i32
    %c0_i32_1 = arith.constant 0 : i32
    return %c0_i32, %c0_i32_0 : i32, i32
  }
  func.func @transform_7(%arg0: i32) -> (i32, i32) {
    %c0_i32 = arith.constant 0 : i32
    %c0_i32_0 = arith.constant 0 : i32
    return %arg0, %c0_i32 : i32, i32
  }
}

</mosaic_0001>

<bundles_post_ra>
// kernel: qnetwork_forward.1
= control target key start
LH: loop header
LB: loop body
LE: loop exit
PB: predicated region body
PF: predicated region fallthrough
CT: control target
= control target key end

     0   :  { %v510_v0 = vmov 0.0   ;;  %vm511_vm0 = vmmov 0   ;;  %s669_s1 = inlined_call_operand.vmem [shape: bf16[128,128], index: 1, kind: input, shape index: {}]   ;;  %s670_s3 = inlined_call_operand.vmem [shape: bf16[128,128], index: 3, kind: input, shape index: {}]   ;;  %s671_s0 = inlined_call_operand.vmem [shape: bf16[8,128], index: 0, kind: input, shape index: {}]   ;;  %s672_s5 = inlined_call_operand.vmem [shape: bf16[128,128], index: 5, kind: input, shape index: {}]   ;;  %s673_s2 = inlined_call_operand.vmem [shape: f32[1,128], index: 2, kind: input, shape index: {}]   ;;  %s674_s4 = inlined_call_operand.vmem [shape: f32[1,128], index: 4, kind: input, shape index: {}]   ;;  %s675_s6 = inlined_call_operand.vmem [shape: f32[1,128], index: 6, kind: input, shape index: {}]   ;;  %s676_s7 = inlined_call_operand.vmem [shape: f32[8,128], index: 7, kind: output, shape index: {}]  }
   0x1   :  { %424 = vmatprep.subr.bf16.mxu0 %v510_v0  ;;  %v486_v1 = vld [vmem:[%s669_s1 + $0x38] sm:$0xff]   ;;  %440 = vmatprep.mubr.msk.bf16.mxu0 %vm511_vm0, %v510_v0  ;;  %v487_v2 = vld [vmem:[%s669_s1 + $0x30] sm:$0xff]   ;;  %v488_v3 = vld [vmem:[%s669_s1 + $0x28] sm:$0xff]  }
   0x2   :  { %444 = vmatprep.subr.bf16.mxu1 %v510_v0  ;;  %460 = vmatprep.mubr.msk.bf16.mxu1 %vm511_vm0, %v510_v0  ;;  %v494_v4 = vld [vmem:[%s670_s3 + $0x38] sm:$0xff]   ;;  %v489_v5 = vld [vmem:[%s669_s1 + $0x20] sm:$0xff]   ;;  %v495_v6 = vld [vmem:[%s670_s3 + $0x30] sm:$0xff]  }
   0x3   :  { %425 = vmatpush3.bf16.msra.mxu0 %v486_v1  ;;  %445 = vmatpush3.bf16.msra.mxu1 %v494_v4  ;;  %v490_v7 = vld [vmem:[%s669_s1 + $0x18] sm:$0xff]   ;;  %v496_v8 = vld [vmem:[%s670_s3 + $0x28] sm:$0xff]   ;;  %v491_v9 = vld [vmem:[%s669_s1 + $0x10] sm:$0xff]  }
   0x4   :  { %426 = vmatprep.subr.bf16.mxu0 %v510_v0  ;;  %446 = vmatprep.subr.bf16.mxu1 %v510_v0  ;;  %v497_v10 = vld [vmem:[%s670_s3 + $0x20] sm:$0xff]   ;;  %v492_v11 = vld [vmem:[%s669_s1 + $0x8] sm:$0xff]   ;;  %v498_v12 = vld [vmem:[%s670_s3 + $0x18] sm:$0xff]  }
   0x5   :  { %v493_v13 = vld [vmem:[%s669_s1] sm:$0xff]   ;;  %v499_v14 = vld [vmem:[%s670_s3 + $0x10] sm:$0xff]   ;;  %v500_v16 = vld [vmem:[%s670_s3 + $0x8] sm:$0xff]  }
   0x6   :  { %v27_v15 = vld [vmem:[%s671_s0] sm:$0xf]  ;;  %v502_v18 = vld [vmem:[%s672_s5 + $0x38] sm:$0xff]   ;;  %v503_v19 = vld [vmem:[%s672_s5 + $0x30] sm:$0xff]  }
   0x7   :  { %427 = vmatpush3.bf16.msra.mxu0 %v487_v2  ;;  %447 = vmatpush3.bf16.msra.mxu1 %v495_v6  ;;  %v501_v17 = vld [vmem:[%s670_s3] sm:$0xff]   ;;  %v504_v20 = vld [vmem:[%s672_s5 + $0x28] sm:$0xff]   ;;  %v506_v22 = vld [vmem:[%s672_s5 + $0x18] sm:$0xff]  }
   0x8   :  { %428 = vmatprep.subr.bf16.mxu0 %v510_v0  ;;  %448 = vmatprep.subr.bf16.mxu1 %v510_v0  ;;  %v505_v21 = vld [vmem:[%s672_s5 + $0x20] sm:$0xff]   ;;  %v507_v23 = vld [vmem:[%s672_s5 + $0x10] sm:$0xff]   ;;  %v508_v32 = vld [vmem:[%s672_s5 + $0x8] sm:$0xff]  }
   0x9   :  { %v370_v24 = vld [vmem:[%s673_s2] ss:$0 sm:$0xff] }
   0xa   :  { %v509_v33 = vld [vmem:[%s672_s5] sm:$0xff]  }
   0xb   :  { %429 = vmatpush3.bf16.msra.mxu0 %v488_v3  ;;  %449 = vmatpush3.bf16.msra.mxu1 %v496_v8  ;;  %v379_v34 = vld [vmem:[%s674_s4] ss:$0 sm:$0xff] }
   0xc   :  { %430 = vmatprep.subr.bf16.mxu0 %v510_v0  ;;  %450 = vmatprep.subr.bf16.mxu1 %v510_v0  ;;  %v388_v42 = vld [vmem:[%s675_s6] ss:$0 sm:$0xff] }
   0xf   :  { %431 = vmatpush3.bf16.msra.mxu0 %v489_v5  ;;  %451 = vmatpush3.bf16.msra.mxu1 %v497_v10 }
  0x10   :  { %432 = vmatprep.subr.bf16.mxu0 %v510_v0  ;;  %452 = vmatprep.subr.bf16.mxu1 %v510_v0 }
  0x13   :  { %433 = vmatpush3.bf16.msra.mxu0 %v490_v7  ;;  %453 = vmatpush3.bf16.msra.mxu1 %v498_v12 }
  0x14   :  { %434 = vmatprep.subr.bf16.mxu0 %v510_v0  ;;  %454 = vmatprep.subr.bf16.mxu1 %v510_v0 }
  0x17   :  { %435 = vmatpush3.bf16.msra.mxu0 %v491_v9  ;;  %455 = vmatpush3.bf16.msra.mxu1 %v499_v14 }
  0x18   :  { %436 = vmatprep.subr.bf16.mxu0 %v510_v0  ;;  %456 = vmatprep.subr.bf16.mxu1 %v510_v0 }
  0x1b   :  { %437 = vmatpush3.bf16.msra.mxu0 %v492_v11  ;;  %457 = vmatpush3.bf16.msra.mxu1 %v500_v16 }
  0x1c   :  { %438 = vmatprep.subr.bf16.mxu0 %v510_v0  ;;  %458 = vmatprep.subr.bf16.mxu1 %v510_v0 }
  0x1f   :  { %439 = vmatpush3.bf16.msra.mxu0 %v493_v13  ;;  %459 = vmatpush3.bf16.msra.mxu1 %v501_v17 }
  0x20   :  { %464 = vmatprep.subr.bf16.mxu0 %v510_v0 }
  0x22   :  { %441 = vmatmul.mubr.bf16.vlgmr.msra.gmra.mxu0 %v27_v15 }
  0x23   :  { %480 = vmatprep.mubr.msk.bf16.mxu0 %vm511_vm0, %v510_v0  ;;  %465 = vmatpush3.bf16.msra.mxu0 %v502_v18 }
  0x24   :  { %466 = vmatprep.subr.bf16.mxu0 %v510_v0 }
  0x27   :  { %467 = vmatpush3.bf16.msra.mxu0 %v503_v19 }
  0x28   :  { %468 = vmatprep.subr.bf16.mxu0 %v510_v0 }
  0x2b   :  { %469 = vmatpush3.bf16.msra.mxu0 %v504_v20 }
  0x2c   :  { %470 = vmatprep.subr.bf16.mxu0 %v510_v0 }
  0x2f   :  { %471 = vmatpush3.bf16.msra.mxu0 %v505_v21 }
  0x30   :  { %472 = vmatprep.subr.bf16.mxu0 %v510_v0 }
  0x33   :  { %473 = vmatpush3.bf16.msra.mxu0 %v506_v22 }
  0x34   :  { %474 = vmatprep.subr.bf16.mxu0 %v510_v0 }
  0x37   :  { %475 = vmatpush3.bf16.msra.mxu0 %v507_v23 }
  0x38   :  { %476 = vmatprep.subr.bf16.mxu0 %v510_v0 }
  0x3b   :  { %477 = vmatpush3.bf16.msra.mxu0 %v508_v32 }
  0x3c   :  { %478 = vmatprep.subr.bf16.mxu0 %v510_v0 }
  0x3f   :  { %479 = vmatpush3.bf16.msra.mxu0 %v509_v33 }
  0xe2   :  { %v133_v25 = vpop.f32.mrf.mxu0 }
  0xe3   :  { %v134_v26 = vadd.f32 %v370_v24, %v133_v25 }
  0xe4   :  { %v442_v27 = vpop.f32.mrf.mxu0 }
  0xe5   :  { %v139_v28 = vmax.f32 %v134_v26, 0.0 }
  0xe6   :  { %v136_v29 = vpop.f32.mrf.mxu0 }
  0xe7   :  { %v140_v30 = vpack.c.bf16 %v139_v28, %v139_v28 }
  0xe8   :  { %v443_v31 = vpop.f32.mrf.mxu0 }
  0xe9   :  { %461 = vmatmul.mubr.bf16.vlgmr.msra.gmra.mxu1 %v140_v30 }
 0x1a9   :  { %v246_v35 = vpop.f32.mrf.mxu1 }
 0x1aa   :  { %v247_v36 = vadd.f32 %v379_v34, %v246_v35 }
 0x1ab   :  { %v462_v37 = vpop.f32.mrf.mxu1 }
 0x1ac   :  { %v252_v38 = vmax.f32 %v247_v36, 0.0 }
 0x1ad   :  { %v249_v39 = vpop.f32.mrf.mxu1 }
 0x1ae   :  { %v253_v40 = vpack.c.bf16 %v252_v38, %v252_v38 }
 0x1af   :  { %v463_v41 = vpop.f32.mrf.mxu1 }
 0x1b0   :  { %481 = vmatmul.mubr.bf16.vlgmr.msra.gmra.mxu0 %v253_v40 }
 0x270   :  { %v359_v43 = vpop.f32.mrf.mxu0 }
 0x271   :  { %v360_v44 = vadd.f32 %v388_v42, %v359_v43 }
 0x272   :  { %v482_v45 = vpop.f32.mrf.mxu0 }
 0x273   :  { %365 = vst [vmem:[%s676_s7] sm:$0xff] %v360_v44 }
 0x274   :  { %v362_v46 = vpop.f32.mrf.mxu0 }
 0x276   :  { %v483_v47 = vpop.f32.mrf.mxu0 }

</bundles_post_ra>
